<compile_context>
chip_gen: v5e
topology: v5e:2x2
jax: 0.10.0
libtpu: 0.0.40
codegen_flags: <defaults>
</compile_context>

<pallas_src>
import functools

import jax
import jax.numpy as jnp
from jax.experimental import pallas as pl
from jax.experimental.pallas import tpu as pltpu

LANE = 128
MAX_TILE_M = 512  # max rows per grid step (multiple of 8 and 16)


def _round_up(x, m):
    return ((x + m - 1) // m) * m


def _cdiv(a, b):
    return -(-a // b)


def _default_compute_dtype():
    """bf16 MXU operands on any TPU (v5e/v6e/v7x are all bf16-native MXUs);
    f32 elsewhere (e.g. interpret mode on CPU)."""
    try:
        platform = jax.devices()[0].platform
    except Exception:
        return jnp.float32
    return jnp.bfloat16 if platform == "tpu" else jnp.float32


def _is_v7x_like():
    """Best-effort detection of a 64-MiB-VMEM chip (TPU7x)."""
    try:
        kind = jax.devices()[0].device_kind.lower()
    except Exception:
        return False
    return "7" in kind


def _resident_spec(shape):
    """BlockSpec for a weight/bias that never changes across the grid:
    constant index map + single buffer (no pointless double-buffering)."""
    try:
        return pl.BlockSpec(shape, lambda i: (0, 0), pipeline_mode=pl.Buffered(1))
    except (TypeError, AttributeError):
        # older/newer API without pipeline_mode: fall back to default buffering
        return pl.BlockSpec(shape, lambda i: (0, 0))


def _mlp_kernel(x_ref, w1_ref, b1_ref, w2_ref, b2_ref, w3_ref, b3_ref, o_ref,
                *, compute_dtype):
    # One tile of rows through the full 3-layer MLP.
    # Matmul operands in `compute_dtype` (bf16 on TPUs, f32 otherwise),
    # accumulation / bias-add / ReLU always in f32. Hidden/output lanes are
    # zero-padded to 128 multiples -> full-vreg VPU work + unmasked vst.
    x = x_ref[...].astype(compute_dtype)
    h = jnp.dot(x, w1_ref[...], preferred_element_type=jnp.float32) + b1_ref[...]
    h = jnp.maximum(h, 0.0)
    h = jnp.dot(h.astype(compute_dtype), w2_ref[...],
                preferred_element_type=jnp.float32) + b2_ref[...]
    h = jnp.maximum(h, 0.0)
    y = jnp.dot(h.astype(compute_dtype), w3_ref[...],
                preferred_element_type=jnp.float32) + b3_ref[...]
    o_ref[...] = y.astype(o_ref.dtype)


def prepare_params(params, compute_dtype=None):
    """Hoisted weight prep: zero-pad hidden/output dims to 128-lane multiples and
    cast weights to the MXU operand dtype ONCE (biases stay f32). Returns
    (padded_arrays, meta); pass the result as `prepared=` to the forward."""
    if compute_dtype is None:
        compute_dtype = _default_compute_dtype()
    w1, b1, w2, b2, w3, b3 = params
    input_dim, hidden_dim = w1.shape
    output_dim = w3.shape[1]
    hid_pad = _round_up(hidden_dim, LANE)
    out_pad = _round_up(output_dim, LANE)
    dh, do = hid_pad - hidden_dim, out_pad - output_dim

    w1p = jnp.pad(w1, ((0, 0), (0, dh))).astype(compute_dtype)
    b1p = jnp.pad(b1.reshape(1, -1), ((0, 0), (0, dh))).astype(jnp.float32)
    w2p = jnp.pad(w2, ((0, dh), (0, dh))).astype(compute_dtype)
    b2p = jnp.pad(b2.reshape(1, -1), ((0, 0), (0, dh))).astype(jnp.float32)
    w3p = jnp.pad(w3, ((0, dh), (0, do))).astype(compute_dtype)
    b3p = jnp.pad(b3.reshape(1, -1), ((0, 0), (0, do))).astype(jnp.float32)

    padded = (w1p, b1p, w2p, b2p, w3p, b3p)
    meta = {"input_dim": int(input_dim), "hidden_dim": int(hidden_dim),
            "output_dim": int(output_dim), "compute_dtype": compute_dtype}
    return padded, meta


@functools.partial(jax.jit, static_argnames=("output_dim", "compute_dtype", "use_pallas"))
def _mlp_forward(x2d, w1p, b1p, w2p, b2p, w3p, b3p,
                 *, output_dim, compute_dtype, use_pallas):
    """x2d: (rows, input_dim) f32 -> (rows, output_dim) f32."""
    rows, input_dim = x2d.shape
    hid_pad = w1p.shape[1]
    out_pad = w3p.shape[1]

    if not use_pallas:
        # Tiny-shape fallback: one XLA fusion, identical numerics to the kernel.
        x = x2d.astype(compute_dtype)
        h = jnp.dot(x, w1p, preferred_element_type=jnp.float32) + b1p
        h = jnp.maximum(h, 0.0)
        h = jnp.dot(h.astype(compute_dtype), w2p, preferred_element_type=jnp.float32) + b2p
        h = jnp.maximum(h, 0.0)
        y = jnp.dot(h.astype(compute_dtype), w3p, preferred_element_type=jnp.float32) + b3p
        return y[:, :output_dim]

    # ---- row tiling: divisor-aware, >=2 blocks when there is enough work ----
    row_align = 16 if jnp.dtype(compute_dtype) == jnp.dtype(jnp.bfloat16) else 8
    rows_a = _round_up(rows, row_align)
    num_blocks = _cdiv(rows_a, MAX_TILE_M)
    if num_blocks < 2 and rows_a > 128:
        num_blocks = 2                       # keep both v7x TensorCores busy
    tile_m = _round_up(_cdiv(rows_a, num_blocks), row_align)
    num_blocks = _cdiv(rows_a, tile_m)
    rows_pad = tile_m * num_blocks

    x_cd = x2d.astype(compute_dtype)
    if rows_pad != rows:
        x_cd = jnp.pad(x_cd, ((0, rows_pad - rows), (0, 0)))

    # ---- explicit scoped-VMEM budget (weights single-buffered, x/out double) ----
    itemsize = jnp.dtype(compute_dtype).itemsize
    need = (2 * tile_m * input_dim * itemsize
            + 2 * tile_m * out_pad * 4
            + (input_dim * hid_pad + hid_pad * hid_pad + hid_pad * out_pad) * itemsize
            + (2 * hid_pad + out_pad) * 4)
    vmem_cap = (56 << 20) if _is_v7x_like() else (100 << 20)
    vmem_bytes = min(max(int(1.5 * need) + (4 << 20), 32 << 20), vmem_cap)

    kernel = functools.partial(_mlp_kernel, compute_dtype=compute_dtype)
    out = pl.pallas_call(
        kernel,
        out_shape=jax.ShapeDtypeStruct((rows_pad, out_pad), jnp.float32),
        grid_spec=pl.GridSpec(
            grid=(num_blocks,),
            in_specs=[
                pl.BlockSpec((tile_m, input_dim), lambda i: (i, 0)),   # x tile
                _resident_spec((input_dim, hid_pad)),                  # w1
                _resident_spec((1, hid_pad)),                          # b1
                _resident_spec((hid_pad, hid_pad)),                    # w2
                _resident_spec((1, hid_pad)),                          # b2
                _resident_spec((hid_pad, out_pad)),                    # w3
                _resident_spec((1, out_pad)),                          # b3
            ],
            out_specs=pl.BlockSpec((tile_m, out_pad), lambda i: (i, 0)),
        ),
        compiler_params=pltpu.CompilerParams(
            dimension_semantics=("parallel",),
            vmem_limit_bytes=vmem_bytes,
        ),
    )(x_cd, w1p, b1p, w2p, b2p, w3p, b3p)
    return out[:rows, :output_dim]


def feedforward_decoder_forward(feature_list, params=None, prepared=None,
                                compute_dtype=None, use_pallas=None):
    """Mirrors FeedforwardDecoder.forward.

    feature_list: list of arrays, each (bs, n_pred_step, num_colors) or
                  (bs, num_colors), length 2*num_objects.
    Pass `prepared=prepare_params(params)` to amortize weight padding/casting.
    Returns (bs, n_pred_step, output_dim) or (bs, output_dim).
    """
    if prepared is None:
        prepared = prepare_params(params, compute_dtype)
    padded, meta = prepared
    compute_dtype = meta["compute_dtype"]
    output_dim = meta["output_dim"]

    feature = jnp.stack(feature_list, axis=0)  # (2*num_objects, bs, [T], num_colors)
    if feature.ndim == 4:
        # permute(1,0,2,3): (bs, 2*num_objects, T, num_colors)
        feature = jnp.transpose(feature, (1, 0, 2, 3))
        bs, n_obj2, n_pred_step, num_colors = feature.shape
        # row index = b * T + t (matches per-step MLP + stack(dim=-2)).
        per_step = jnp.transpose(feature, (0, 2, 1, 3))  # (bs, T, 2*num_objects, C)
        x2d = per_step.reshape(bs * n_pred_step, n_obj2 * num_colors)
    else:
        feature = jnp.transpose(feature, (1, 0, 2))
        bs = feature.shape[0]
        n_pred_step = None
        x2d = feature.reshape(bs, -1)

    rows = x2d.shape[0]
    if use_pallas is None:
        # Tiny batches are overhead-dominated in a pallas_call; let XLA fuse them.
        use_pallas = rows >= 128

    y2d = _mlp_forward(x2d, *padded, output_dim=output_dim,
                       compute_dtype=compute_dtype, use_pallas=bool(use_pallas))
    if n_pred_step is None:
        return y2d
    return y2d.reshape(bs, n_pred_step, output_dim)


def init_params(key, input_dim, hidden_dim, output_dim):
    """PyTorch-Linear-style init (y = x @ W.T + b); weights stored as (in, out)."""
    ks = jax.random.split(key, 6)

    def linear(kw, kb, fan_in, fan_out):
        bound = 1.0 / jnp.sqrt(fan_in)
        w = jax.random.uniform(kw, (fan_in, fan_out), jnp.float32, -bound, bound)
        b = jax.random.uniform(kb, (1, fan_out), jnp.float32, -bound, bound)
        return w, b

    w1, b1 = linear(ks[0], ks[1], input_dim, hidden_dim)
    w2, b2 = linear(ks[2], ks[3], hidden_dim, hidden_dim)
    w3, b3 = linear(ks[4], ks[5], hidden_dim, output_dim)
    return (w1, b1, w2, b2, w3, b3)


def _reference_forward(feature_list, params):
    """Pure-JAX f32 reference replicating the PyTorch module exactly."""
    w1, b1, w2, b2, w3, b3 = params

    def mlp(x):
        h = jnp.maximum(x @ w1 + b1, 0.0)
        h = jnp.maximum(h @ w2 + b2, 0.0)
        return h @ w3 + b3

    feature = jnp.stack(feature_list, axis=0)
    if feature.ndim == 4:
        feature = jnp.transpose(feature, (1, 0, 2, 3))
        outs = []
        for t in range(feature.shape[-2]):
            f_t = feature[:, :, t, :].reshape(feature.shape[0], -1)
            outs.append(mlp(f_t))
        return jnp.stack(outs, axis=-2)
    else:
        feature = jnp.transpose(feature, (1, 0, 2))
        return mlp(feature.reshape(feature.shape[0], -1))


if __name__ == "__main__":
    # Small, module-consistent shapes.
    bs, n_pred_step, num_objects, num_colors = 2, 3, 2, 8
    n_features = 2 * num_objects          # length of the input feature list
    input_dim = n_features * num_colors   # 32
    hidden_dim = 32
    output_dim = 4                        # reward_dim

    key = jax.random.PRNGKey(0)
    k_params, k_small, k_big = jax.random.split(key, 3)
    params = init_params(k_params, input_dim, hidden_dim, output_dim)

    data_keys = jax.random.split(k_small, n_features)
    feats_small = [
        jax.random.normal(data_keys[i], (bs, n_pred_step, num_colors), jnp.float32)
        for i in range(n_features)
    ]
    ref_small = _reference_forward(feats_small, params)

    # 1) exact-precision Pallas path (f32 MXU operands), forced — tight tolerance.
    prep_f32 = prepare_params(params, compute_dtype=jnp.float32)
    out_f32 = jax.block_until_ready(
        feedforward_decoder_forward(feats_small, prepared=prep_f32, use_pallas=True))
    assert out_f32.shape == (bs, n_pred_step, output_dim), out_f32.shape
    assert jnp.allclose(out_f32, ref_small, atol=1e-4, rtol=1e-4), "f32 pallas mismatch"

    # 2) default path (bf16 MXU operands on TPU), forced through the Pallas kernel.
    prep = prepare_params(params)
    tol = 5e-2 if prep[1]["compute_dtype"] == jnp.bfloat16 else 1e-4
    out_def = jax.block_until_ready(
        feedforward_decoder_forward(feats_small, prepared=prep, use_pallas=True))
    assert out_def.shape == (bs, n_pred_step, output_dim), out_def.shape
    assert jnp.allclose(out_def, ref_small, atol=tol, rtol=tol), "default pallas mismatch"

    # 3) auto dispatch at tiny sizes -> fused-XLA fallback, same numerics.
    out_auto = jax.block_until_ready(
        feedforward_decoder_forward(feats_small, prepared=prep))
    assert jnp.allclose(out_auto, ref_small, atol=tol, rtol=tol), "fallback mismatch"

    # 4) larger batch: auto dispatch uses the Pallas kernel with a multi-block grid.
    bs_big, steps_big = 64, 5   # 320 rows -> 2 row blocks (both v7x TCs get work)
    keys_b = jax.random.split(k_big, n_features)
    feats_big = [
        jax.random.normal(keys_b[i], (bs_big, steps_big, num_colors), jnp.float32)
        for i in range(n_features)
    ]
    ref_big = _reference_forward(feats_big, params)
    out_big = jax.block_until_ready(
        feedforward_decoder_forward(feats_big, prepared=prep))
    assert out_big.shape == (bs_big, steps_big, output_dim), out_big.shape
    assert jnp.allclose(out_big, ref_big, atol=tol, rtol=tol), "big-batch mismatch"

    print("KERNEL_OK")
</pallas_src>

<mosaic_0001>
module attributes {stable_mosaic.version = 11 : i64} {
  func.func @_mlp_kernel(%arg0: i32, %arg1: memref<8x32xf32, #tpu.memory_space<vmem>>, %arg2: memref<32x128xf32, #tpu.memory_space<vmem>>, %arg3: memref<1x128xf32, #tpu.memory_space<vmem>>, %arg4: memref<128x128xf32, #tpu.memory_space<vmem>>, %arg5: memref<1x128xf32, #tpu.memory_space<vmem>>, %arg6: memref<128x128xf32, #tpu.memory_space<vmem>>, %arg7: memref<1x128xf32, #tpu.memory_space<vmem>>, %arg8: memref<8x128xf32, #tpu.memory_space<vmem>>) attributes {dimension_semantics = [#tpu.dimension_semantics<parallel>], iteration_bounds = array<i64: 1>, scalar_prefetch = 0 : i64, scratch_operands = 0 : i64, tpu.core_type = #tpu.core_type<tc>, window_params = [{transform_indices = @transform_0, window_bounds = array<i64: 8, 32>}, {pipeline_mode = #tpu.pipeline_mode<synchronous>, transform_indices = @transform_1, window_bounds = array<i64: 32, 128>}, {pipeline_mode = #tpu.pipeline_mode<synchronous>, transform_indices = @transform_2, window_bounds = array<i64: 1, 128>}, {pipeline_mode = #tpu.pipeline_mode<synchronous>, transform_indices = @transform_3, window_bounds = array<i64: 128, 128>}, {pipeline_mode = #tpu.pipeline_mode<synchronous>, transform_indices = @transform_4, window_bounds = array<i64: 1, 128>}, {pipeline_mode = #tpu.pipeline_mode<synchronous>, transform_indices = @transform_5, window_bounds = array<i64: 128, 128>}, {pipeline_mode = #tpu.pipeline_mode<synchronous>, transform_indices = @transform_6, window_bounds = array<i64: 1, 128>}, {transform_indices = @transform_7, window_bounds = array<i64: 8, 128>}]} {
    %c0 = arith.constant 0 : index
    %c0_0 = arith.constant 0 : index
    %0 = vector.load %arg1[%c0, %c0_0] : memref<8x32xf32, #tpu.memory_space<vmem>>, vector<8x32xf32>
    %c0_1 = arith.constant 0 : index
    %c0_2 = arith.constant 0 : index
    %1 = vector.load %arg2[%c0_1, %c0_2] : memref<32x128xf32, #tpu.memory_space<vmem>>, vector<32x128xf32>
    %cst = arith.constant dense<0.000000e+00> : vector<8x128xf32>
    %2 = tpu.matmul %0, %1, %cst {dimension_numbers = #tpu.dot_dimension_numbers<[1], [0], [0], [1], [0, 0, 1, 1], [], []>} : vector<8x32xf32>, vector<32x128xf32>, vector<8x128xf32> -> vector<8x128xf32>
    %c0_3 = arith.constant 0 : index
    %c0_4 = arith.constant 0 : index
    %3 = vector.load %arg3[%c0_3, %c0_4] : memref<1x128xf32, #tpu.memory_space<vmem>>, vector<1x128xf32>
    %4 = vector.broadcast %3 : vector<1x128xf32> to vector<8x128xf32>
    %5 = arith.addf %2, %4 : vector<8x128xf32>
    %cst_5 = arith.constant 0.000000e+00 : f32
    %6 = vector.broadcast %cst_5 : f32 to vector<8x128xf32>
    %7 = arith.maximumf %5, %6 : vector<8x128xf32>
    %c0_6 = arith.constant 0 : index
    %c0_7 = arith.constant 0 : index
    %8 = vector.load %arg4[%c0_6, %c0_7] : memref<128x128xf32, #tpu.memory_space<vmem>>, vector<128x128xf32>
    %cst_8 = arith.constant dense<0.000000e+00> : vector<8x128xf32>
    %9 = tpu.matmul %7, %8, %cst_8 {dimension_numbers = #tpu.dot_dimension_numbers<[1], [0], [0], [1], [0, 0, 1, 1], [], []>} : vector<8x128xf32>, vector<128x128xf32>, vector<8x128xf32> -> vector<8x128xf32>
    %c0_9 = arith.constant 0 : index
    %c0_10 = arith.constant 0 : index
    %10 = vector.load %arg5[%c0_9, %c0_10] : memref<1x128xf32, #tpu.memory_space<vmem>>, vector<1x128xf32>
    %11 = vector.broadcast %10 : vector<1x128xf32> to vector<8x128xf32>
    %12 = arith.addf %9, %11 : vector<8x128xf32>
    %cst_11 = arith.constant 0.000000e+00 : f32
    %13 = vector.broadcast %cst_11 : f32 to vector<8x128xf32>
    %14 = arith.maximumf %12, %13 : vector<8x128xf32>
    %c0_12 = arith.constant 0 : index
    %c0_13 = arith.constant 0 : index
    %15 = vector.load %arg6[%c0_12, %c0_13] : memref<128x128xf32, #tpu.memory_space<vmem>>, vector<128x128xf32>
    %cst_14 = arith.constant dense<0.000000e+00> : vector<8x128xf32>
    %16 = tpu.matmul %14, %15, %cst_14 {dimension_numbers = #tpu.dot_dimension_numbers<[1], [0], [0], [1], [0, 0, 1, 1], [], []>} : vector<8x128xf32>, vector<128x128xf32>, vector<8x128xf32> -> vector<8x128xf32>
    %c0_15 = arith.constant 0 : index
    %c0_16 = arith.constant 0 : index
    %17 = vector.load %arg7[%c0_15, %c0_16] : memref<1x128xf32, #tpu.memory_space<vmem>>, vector<1x128xf32>
    %18 = vector.broadcast %17 : vector<1x128xf32> to vector<8x128xf32>
    %19 = arith.addf %16, %18 : vector<8x128xf32>
    %c0_17 = arith.constant 0 : index
    %c0_18 = arith.constant 0 : index
    %20 = vector.load %arg8[%c0_17, %c0_18] : memref<8x128xf32, #tpu.memory_space<vmem>>, vector<8x128xf32>
    tpu.vector_store %arg8[%c0_17, %c0_18], %19 {strides = array<i32>} : memref<8x128xf32, #tpu.memory_space<vmem>>, vector<8x128xf32>,
    return
  }
  func.func @transform_0(%arg0: i32) -> (i32, i32) {
    %c0_i32 = arith.constant 0 : i32
    %c0_i32_0 = arith.constant 0 : i32
    return %arg0, %c0_i32 : i32, i32
  }
  func.func @transform_1(%arg0: i32) -> (i32, i32) {
    %c0_i32 = arith.constant 0 : i32
    %c0_i32_0 = arith.constant 0 : i32
    %c0_i32_1 = arith.constant 0 : i32
    return %c0_i32, %c0_i32_0 : i32, i32
  }
  func.func @transform_2(%arg0: i32) -> (i32, i32) {
    %c0_i32 = arith.constant 0 : i32
    %c0_i32_0 = arith.constant 0 : i32
    %c0_i32_1 = arith.constant 0 : i32
    return %c0_i32, %c0_i32_0 : i32, i32
  }
  func.func @transform_3(%arg0: i32) -> (i32, i32) {
    %c0_i32 = arith.constant 0 : i32
    %c0_i32_0 = arith.constant 0 : i32
    %c0_i32_1 = arith.constant 0 : i32
    return %c0_i32, %c0_i32_0 : i32, i32
  }
  func.func @transform_4(%arg0: i32) -> (i32, i32) {
    %c0_i32 = arith.constant 0 : i32
    %c0_i32_0 = arith.constant 0 : i32
    %c0_i32_1 = arith.constant 0 : i32
    return %c0_i32, %c0_i32_0 : i32, i32
  }
  func.func @transform_5(%arg0: i32) -> (i32, i32) {
    %c0_i32 = arith.constant 0 : i32
    %c0_i32_0 = arith.constant 0 : i32
    %c0_i32_1 = arith.constant 0 : i32
    return %c0_i32, %c0_i32_0 : i32, i32
  }
  func.func @transform_6(%arg0: i32) -> (i32, i32) {
    %c0_i32 = arith.constant 0 : i32
    %c0_i32_0 = arith.constant 0 : i32
    %c0_i32_1 = arith.constant 0 : i32
    return %c0_i32, %c0_i32_0 : i32, i32
  }
  func.func @transform_7(%arg0: i32) -> (i32, i32) {
    %c0_i32 = arith.constant 0 : i32
    %c0_i32_0 = arith.constant 0 : i32
    return %arg0, %c0_i32 : i32, i32
  }
}

</mosaic_0001>

<bundles_post_ra>
// kernel: _mlp_forward.1
= control target key start
LH: loop header
LB: loop body
LE: loop exit
PB: predicated region body
PF: predicated region fallthrough
CT: control target
= control target key end

     0   :  { %12 = vsyncpa [#allocation3], 0  ;;  %s349_s0 = inlined_call_operand.vmem [shape: f32[8,32], index: 0, kind: input, shape index: {}]   ;;  %s350_s1 = inlined_call_operand.hbm [shape: f32[32,128], index: 1, kind: input, shape index: {}]   ;;  %s351_s2 = inlined_call_operand.vmem [shape: f32[1,128], index: 2, kind: input, shape index: {}]   ;;  %s352_s3 = inlined_call_operand.hbm [shape: f32[128,128], index: 3, kind: input, shape index: {}]   ;;  %s353_s4 = inlined_call_operand.vmem [shape: f32[1,128], index: 4, kind: input, shape index: {}]   ;;  %s354_s5 = inlined_call_operand.hbm [shape: f32[128,128], index: 5, kind: input, shape index: {}]   ;;  %s355_s6 = inlined_call_operand.vmem [shape: f32[1,128], index: 6, kind: input, shape index: {}]   ;;  %s356_s7 = inlined_call_operand.vmem [shape: f32[8,128], index: 7, kind: output, shape index: {}]  }
   0x1   :  { %13 = vsyncpa [#allocation5], 0  ;;  %s35_s26 = sshll.u32 %s352_s3, 4  ;;  %s280_s27 = smov [#allocation4]   ;;  %s36_s26 = int_to_ptr.hbm [resolvable:$true] %s35_s26 }
   0x2   :  { %s37_s28 = sshll.u32 %s280_s27, 4  ;;  %s20_s8 = sshll.u32 %s350_s1, 4  ;;  %s38_s28 = int_to_ptr.vmem [resolvable:$true] %s37_s28  ;;  %s21_s8 = int_to_ptr.hbm [resolvable:$true] %s20_s8 }
   0x3   :  { %s281_s9 = smov 128   ;;  %s282_s10 = smov 8  }
   0x4   :  { %43 = dma.hbm_to_vmem [thread:$0]  %s36_s26, 2048, %s38_s28, [#allocation5], %s281_s9, %s281_s9, %s282_s10  }
   0x5   :  { %s283_s11 = smov [#allocation2]   ;;  %s50_s15 = sshll.u32 %s354_s5, 4  ;;  %s51_s15 = int_to_ptr.hbm [resolvable:$true] %s50_s15 }
   0x6   :  { %s22_s12 = sshll.u32 %s283_s11, 4  ;;  %s284_s3 = smov [#allocation6]   ;;  %s23_s12 = int_to_ptr.vmem [resolvable:$true] %s22_s12 }
   0x7   :  { %28 = dma.hbm_to_vmem [thread:$0]  %s21_s8, 512, %s23_s12, [#allocation3], %s281_s9, %s281_s9, %s282_s10  }
   0x8   :  { %s52_s16 = sshll.u32 %s284_s3, 4  ;;  %s53_s16 = int_to_ptr.vmem [resolvable:$true] %s52_s16 }
   0x9   :  { %58 = dma.hbm_to_vmem [thread:$0]  %s51_s15, 2048, %s53_s16, [#allocation5], %s281_s9, %s281_s9, %s282_s10  }
   0xa   :  { %276 = dma.done.wait [#allocation3], 512  }
   0xb   :  { %277 = vsyncadd [#allocation3], 4294966784 }
   0xc   :  { %278 = dma.done.wait [#allocation5], 4096  }
   0xd   :  { %279 = vsyncadd [#allocation5], 4294963200  ;;  %v77_v0 = vld [vmem:[#allocation2 + $0x18] sm:$0xff]  ;;  %v76_v1 = vld [vmem:[#allocation2 + $0x10] sm:$0xff]  ;;  %vm82_vm0 = vcmask 261120  }
   0xe   :  { %98 = vmatpush.msra.mxu0 %v77_v0  ;;  %v122_v2 = vld [vmem:[#allocation4 + $0x78] sm:$0xff]  ;;  %v75_v3 = vld [vmem:[#allocation2 + $0x8] sm:$0xff]  ;;  %v121_v4 = vld [vmem:[#allocation4 + $0x70] sm:$0xff] }
   0xf   :  { %127 = vmatpush.msra.mxu1 %v122_v2  ;;  %v120_v5 = vld [vmem:[#allocation4 + $0x68] sm:$0xff]  ;;  %v74_v6 = vld [vmem:[#allocation2] sm:$0xff]  ;;  %v118_v9 = vld [vmem:[#allocation4 + $0x58] sm:$0xff] }
  0x10   :  { %99 = vmatpush.msra.mxu0 %v76_v1  ;;  %v73_v7 = vld [vmem:[%s349_s0] sm:$0xff]  ;;  %v117_v10 = vld [vmem:[#allocation4 + $0x50] sm:$0xff]  ;;  %v116_v11 = vld [vmem:[#allocation4 + $0x48] sm:$0xff] }
  0x11   :  { %128 = vmatpush.msra.mxu1 %v121_v4  ;;  %v119_v8 = vld [vmem:[#allocation4 + $0x60] sm:$0xff]  ;;  %v114_v13 = vld [vmem:[#allocation4 + $0x38] sm:$0xff]  ;;  %v113_v14 = vld [vmem:[#allocation4 + $0x30] sm:$0xff] }
  0x12   :  { %100 = vmatpush.msra.mxu0 %v75_v3  ;;  %v115_v12 = vld [vmem:[#allocation4 + $0x40] sm:$0xff]  ;;  %v112_v15 = vld [vmem:[#allocation4 + $0x28] sm:$0xff]  ;;  %v110_v17 = vld [vmem:[#allocation4 + $0x18] sm:$0xff] }
  0x13   :  { %129 = vmatpush.msra.mxu1 %v120_v5  ;;  %v111_v16 = vld [vmem:[#allocation4 + $0x20] sm:$0xff]  ;;  %v109_v18 = vld [vmem:[#allocation4 + $0x10] sm:$0xff]  ;;  %v108_v19 = vld [vmem:[#allocation4 + $0x8] sm:$0xff] }
  0x14   :  { %101 = vmatpush.msra.mxu0 %v74_v6  ;;  %v107_v20 = vld [vmem:[#allocation4] sm:$0xff]  ;;  %v163_v21 = vld [vmem:[#allocation6 + $0x78] sm:$0xff]  ;;  %v162_v22 = vld [vmem:[#allocation6 + $0x70] sm:$0xff] }
  0x15   :  { %195 = vmatmul.msk.f32.vlgmr.msra.gmra.mxu0 %vm82_vm0, %v73_v7  ;;  %130 = vmatpush.msra.mxu1 %v119_v8  ;;  %v161_v23 = vld [vmem:[#allocation6 + $0x68] sm:$0xff]  ;;  %v160_v24 = vld [vmem:[#allocation6 + $0x60] sm:$0xff]  ;;  %v159_v25 = vld [vmem:[#allocation6 + $0x58] sm:$0xff] }
  0x16   :  { %168 = vmatpush.msra.mxu2 %v163_v21  ;;  %v158_v26 = vld [vmem:[#allocation6 + $0x50] sm:$0xff]  ;;  %v157_v27 = vld [vmem:[#allocation6 + $0x48] sm:$0xff]  ;;  %v156_v28 = vld [vmem:[#allocation6 + $0x40] sm:$0xff] }
  0x17   :  { %131 = vmatpush.msra.mxu1 %v118_v9  ;;  %v155_v29 = vld [vmem:[#allocation6 + $0x38] sm:$0xff]  ;;  %v154_v30 = vld [vmem:[#allocation6 + $0x30] sm:$0xff]  ;;  %v153_v31 = vld [vmem:[#allocation6 + $0x28] sm:$0xff] }
  0x18   :  { %169 = vmatpush.msra.mxu2 %v162_v22  ;;  %v152_v32 = vld [vmem:[#allocation6 + $0x20] sm:$0xff]  ;;  %v151_v33 = vld [vmem:[#allocation6 + $0x18] sm:$0xff]  ;;  %v150_v38 = vld [vmem:[#allocation6 + $0x10] sm:$0xff] }
  0x19   :  { %132 = vmatpush.msra.mxu1 %v117_v10  ;;  %v201_v34 = vld [vmem:[%s351_s2] ss:$0 sm:$0xff]  ;;  %v149_v39 = vld [vmem:[#allocation6 + $0x8] sm:$0xff] }
  0x1a   :  { %170 = vmatpush.msra.mxu2 %v161_v23  ;;  %v148_v40 = vld [vmem:[#allocation6] sm:$0xff] }
  0x1b   :  { %133 = vmatpush.msra.mxu1 %v116_v11  ;;  %v202_v41 = vld [vmem:[%s353_s4] ss:$0 sm:$0xff] }
  0x1c   :  { %171 = vmatpush.msra.mxu2 %v160_v24  ;;  %v203_v45 = vld [vmem:[%s355_s6] ss:$0 sm:$0xff] }
  0x1d   :  { %134 = vmatpush.msra.mxu1 %v115_v12 }
  0x1e   :  { %172 = vmatpush.msra.mxu2 %v159_v25 }
  0x1f   :  { %135 = vmatpush.msra.mxu1 %v114_v13 }
  0x20   :  { %173 = vmatpush.msra.mxu2 %v158_v26 }
  0x21   :  { %136 = vmatpush.msra.mxu1 %v113_v14 }
  0x22   :  { %174 = vmatpush.msra.mxu2 %v157_v27 }
  0x23   :  { %137 = vmatpush.msra.mxu1 %v112_v15 }
  0x24   :  { %175 = vmatpush.msra.mxu2 %v156_v28 }
  0x25   :  { %138 = vmatpush.msra.mxu1 %v111_v16 }
  0x26   :  { %176 = vmatpush.msra.mxu2 %v155_v29 }
  0x27   :  { %139 = vmatpush.msra.mxu1 %v110_v17 }
  0x28   :  { %177 = vmatpush.msra.mxu2 %v154_v30 }
  0x29   :  { %140 = vmatpush.msra.mxu1 %v109_v18 }
  0x2a   :  { %178 = vmatpush.msra.mxu2 %v153_v31 }
  0x2b   :  { %141 = vmatpush.msra.mxu1 %v108_v19 }
  0x2c   :  { %179 = vmatpush.msra.mxu2 %v152_v32 }
  0x2d   :  { %142 = vmatpush.msra.mxu1 %v107_v20 }
  0x2e   :  { %180 = vmatpush.msra.mxu2 %v151_v33 }
  0x30   :  { %181 = vmatpush.msra.mxu2 %v150_v38 }
  0x32   :  { %182 = vmatpush.msra.mxu2 %v149_v39 }
  0x34   :  { %183 = vmatpush.msra.mxu2 %v148_v40 }
  0x92   :  { %v103_v35 = vpop.f32.mrf.mxu0 }
  0x93   :  { %v104_v36 = vadd.f32 %v201_v34, %v103_v35 }
  0x95   :  { %v106_v37 = vmax.f32 %v104_v36, 0.0 }
  0x97   :  { %143 = vmatmul.f32.vlgmr.msra.gmra.mxu1 %v106_v37 }
 0x114   :  { %v144_v42 = vpop.f32.mrf.mxu1 }
 0x115   :  { %v145_v43 = vadd.f32 %v202_v41, %v144_v42 }
 0x117   :  { %v147_v44 = vmax.f32 %v145_v43, 0.0 }
 0x119   :  { %184 = vmatmul.f32.vlgmr.msra.gmra.mxu2 %v147_v44 }
 0x19c   :  { %v185_v46 = vpop.f32.mrf.mxu2 }
 0x19d   :  { %v186_v47 = vadd.f32 %v203_v45, %v185_v46 }
 0x19f   :  { %188 = vst [vmem:[%s356_s7] sm:$0xff] %v186_v47 }
 0x1a0   :  { %193 = vsyncpa [#allocation3], 1 }
 0x1a1   :  { %194 = vsyncpa [#allocation5], 1 }

</bundles_post_ra>
